<compile_context>
chip_gen: v6e
topology: v6e:2x2x1
jax: 0.10.0
libtpu: 0.0.40
codegen_flags: <defaults>
</compile_context>

<pallas_src>
import jax
import jax.numpy as jnp
from jax.experimental import pallas as pl
from jax.experimental.pallas import tpu as pltpu


def _round_up(x, m):
    return ((x + m - 1) // m) * m


def input_gate_kernel(x_ref, h_ref, w_ref, b_ref, o_ref):
    # z = inputs + short_term_memory   (f32, lane-padded)
    z = x_ref[...] + h_ref[...]
    # One fused matmul: (TB, Fp) @ (Fp, 2*Fp) -> (TB, 2*Fp); bf16 operands,
    # f32 accumulation via preferred_element_type.
    pre = jnp.dot(z.astype(w_ref.dtype), w_ref[...],
                  preferred_element_type=jnp.float32) + b_ref[...]
    # Single tanh pass over the whole slab.  The sigmoid half of the fused
    # weights/bias was pre-scaled by 0.5 in the wrapper, so
    #   0.5*(tanh(pre_sig)+1) == sigmoid(z @ Ws^T + bs)
    #   tanh(pre_tanh)        == tanh(z @ Wt^T + bt)
    th = jnp.tanh(pre)
    nf = o_ref.shape[-1]             # == Fp, a multiple of 128 -> aligned split
    gate = 0.5 * (th[:, :nf] + 1.0)
    cand = th[:, nf:]
    # Single fused epilogue expression (no extra f32 materialization).
    o_ref[...] = (gate * cand).astype(o_ref.dtype)


def input_gate(inputs, short_term_memory, w_sig, b_sig, w_tanh, b_tanh,
               *, block_b=512, matmul_dtype=jnp.bfloat16, lane_multiple=128):
    """Pallas forward of InputGate.

    inputs, short_term_memory: (B, F) float32
    w_sig, w_tanh: (F, F) float32 in PyTorch Linear layout [out, in]
    b_sig, b_tanh: (F,)  float32
    """
    B, F = inputs.shape

    # ---- Lane-aligned feature padding (K and N), fused weight build ----
    Fp = _round_up(max(F, lane_multiple), lane_multiple)

    def pad_wt(w):  # [out,in] -> (in,out) padded to (Fp, Fp) with zeros
        return jnp.pad(w.T, ((0, Fp - F), (0, Fp - F)))

    # Fold the 0.5 of the sigmoid-via-tanh rewrite into the sigmoid half
    # (power-of-two scale: exact in bf16).
    w_cat = jnp.concatenate([0.5 * pad_wt(w_sig), pad_wt(w_tanh)],
                            axis=1).astype(matmul_dtype)            # (Fp, 2Fp)
    b_cat = jnp.concatenate([jnp.pad(0.5 * b_sig, (0, Fp - F)),
                             jnp.pad(b_tanh, (0, Fp - F))]
                            ).reshape(1, 2 * Fp).astype(jnp.float32)

    # ---- Batch tiling: big tiles, no ragged blocks, >=2 grid steps if possible
    Bp = _round_up(B, 8)
    tb = min(block_b, Bp)
    if pl.cdiv(Bp, tb) < 2 and Bp >= 16:
        # Keep at least 2 grid steps so v7x's 2 TensorCores both get work.
        tb = _round_up(pl.cdiv(Bp, 2), 8)
    Bp = _round_up(Bp, tb)
    grid = (Bp // tb,)

    x = jnp.pad(inputs, ((0, Bp - B), (0, Fp - F)))
    h = jnp.pad(short_term_memory, ((0, Bp - B), (0, Fp - F)))

    # ---- BlockSpecs ----
    act_spec = pl.BlockSpec((tb, Fp), lambda i: (i, 0))
    # Constant index_map -> resident across the batch loop; single-buffer them.
    w_spec = pl.BlockSpec((Fp, 2 * Fp), lambda i: (0, 0),
                          pipeline_mode=pl.Buffered(1))
    b_spec = pl.BlockSpec((1, 2 * Fp), lambda i: (0, 0),
                          pipeline_mode=pl.Buffered(1))

    # ---- Explicit VMEM budget ----
    itemsize = jnp.dtype(matmul_dtype).itemsize
    weights_bytes = Fp * (2 * Fp) * itemsize            # single-buffered
    bias_bytes = (2 * Fp) * 4
    io_bytes = 3 * 2 * tb * Fp * 4                      # x, h, out double-buffered
    slab_bytes = 3 * tb * (2 * Fp) * 4                  # pre / tanh / product f32
    vmem_limit = int(1.25 * (weights_bytes + bias_bytes + io_bytes + slab_bytes)) \
        + (2 << 20)
    vmem_limit = min(max(vmem_limit, 16 << 20), 64 << 20)

    out = pl.pallas_call(
        input_gate_kernel,
        out_shape=jax.ShapeDtypeStruct((Bp, Fp), inputs.dtype),
        grid=grid,
        in_specs=[act_spec, act_spec, w_spec, b_spec],
        out_specs=act_spec,
        compiler_params=pltpu.CompilerParams(
            dimension_semantics=("parallel",),
            vmem_limit_bytes=vmem_limit),
    )(x, h, w_cat, b_cat)

    return out[:B, :F]


def input_gate_ref(inputs, short_term_memory, w_sig, b_sig, w_tanh, b_tanh):
    z = inputs + short_term_memory
    return jax.nn.sigmoid(z @ w_sig.T + b_sig) * jnp.tanh(z @ w_tanh.T + b_tanh)


if __name__ == "__main__":
    B, F = 8, 32  # batch, n_features
    key = jax.random.PRNGKey(0)
    k1, k2, k3, k4, k5, k6 = jax.random.split(key, 6)

    inputs = jax.random.normal(k1, (B, F), dtype=jnp.float32)
    short_term_memory = jax.random.normal(k2, (B, F), dtype=jnp.float32)

    # Deterministic init mimicking nn.Linear's uniform(-1/sqrt(F), 1/sqrt(F)).
    bound = 1.0 / jnp.sqrt(jnp.float32(F))
    w_sig = jax.random.uniform(k3, (F, F), jnp.float32, -bound, bound)
    b_sig = jax.random.uniform(k4, (F,), jnp.float32, -bound, bound)
    w_tanh = jax.random.uniform(k5, (F, F), jnp.float32, -bound, bound)
    b_tanh = jax.random.uniform(k6, (F,), jnp.float32, -bound, bound)

    out = input_gate(inputs, short_term_memory, w_sig, b_sig, w_tanh, b_tanh)
    out = jax.block_until_ready(out)

    ref = input_gate_ref(inputs, short_term_memory, w_sig, b_sig, w_tanh, b_tanh)
    assert out.shape == (B, F)
    # bf16 matmul operands (f32 accumulation): relaxed tolerance vs f32 reference.
    assert jnp.allclose(out, ref, atol=2e-2, rtol=2e-2), "mismatch vs reference"

    print("KERNEL_OK")
</pallas_src>

<mosaic_0001>
module attributes {stable_mosaic.version = 11 : i64} {
  func.func @input_gate_kernel(%arg0: i32, %arg1: memref<8x128xf32, #tpu.memory_space<vmem>>, %arg2: memref<8x128xf32, #tpu.memory_space<vmem>>, %arg3: memref<128x256xbf16, #tpu.memory_space<vmem>>, %arg4: memref<1x256xf32, #tpu.memory_space<vmem>>, %arg5: memref<8x128xf32, #tpu.memory_space<vmem>>) attributes {dimension_semantics = [#tpu.dimension_semantics<parallel>], iteration_bounds = array<i64: 1>, scalar_prefetch = 0 : i64, scratch_operands = 0 : i64, tpu.core_type = #tpu.core_type<tc>, window_params = [{transform_indices = @transform_0, window_bounds = array<i64: 8, 128>}, {transform_indices = @transform_1, window_bounds = array<i64: 8, 128>}, {pipeline_mode = #tpu.pipeline_mode<synchronous>, transform_indices = @transform_2, window_bounds = array<i64: 128, 256>}, {pipeline_mode = #tpu.pipeline_mode<synchronous>, transform_indices = @transform_3, window_bounds = array<i64: 1, 256>}, {transform_indices = @transform_4, window_bounds = array<i64: 8, 128>}]} {
    %c0 = arith.constant 0 : index
    %c0_0 = arith.constant 0 : index
    %0 = vector.load %arg1[%c0, %c0_0] : memref<8x128xf32, #tpu.memory_space<vmem>>, vector<8x128xf32>
    %c0_1 = arith.constant 0 : index
    %c0_2 = arith.constant 0 : index
    %1 = vector.load %arg2[%c0_1, %c0_2] : memref<8x128xf32, #tpu.memory_space<vmem>>, vector<8x128xf32>
    %2 = arith.addf %0, %1 : vector<8x128xf32>
    %3 = arith.truncf %2 : vector<8x128xf32> to vector<8x128xbf16>
    %c0_3 = arith.constant 0 : index
    %c0_4 = arith.constant 0 : index
    %4 = vector.load %arg3[%c0_3, %c0_4] : memref<128x256xbf16, #tpu.memory_space<vmem>>, vector<128x256xbf16>
    %cst = arith.constant dense<0.000000e+00> : vector<8x256xf32>
    %5 = tpu.matmul %3, %4, %cst {dimension_numbers = #tpu.dot_dimension_numbers<[1], [0], [0], [1], [0, 0, 1, 1], [], []>} : vector<8x128xbf16>, vector<128x256xbf16>, vector<8x256xf32> -> vector<8x256xf32>
    %c0_5 = arith.constant 0 : index
    %c0_6 = arith.constant 0 : index
    %6 = vector.load %arg4[%c0_5, %c0_6] : memref<1x256xf32, #tpu.memory_space<vmem>>, vector<1x256xf32>
    %7 = vector.broadcast %6 : vector<1x256xf32> to vector<8x256xf32>
    %8 = arith.addf %5, %7 : vector<8x256xf32>
    %9 = math.tanh %8 : vector<8x256xf32>
    %10 = vector.extract_strided_slice %9 {offsets = [0, 0], sizes = [8, 128], strides = [1, 1]} : vector<8x256xf32> to vector<8x128xf32>
    %cst_7 = arith.constant 1.000000e+00 : f32
    %11 = vector.broadcast %cst_7 : f32 to vector<8x128xf32>
    %12 = arith.addf %10, %11 : vector<8x128xf32>
    %cst_8 = arith.constant 5.000000e-01 : f32
    %13 = vector.broadcast %cst_8 : f32 to vector<8x128xf32>
    %14 = arith.mulf %13, %12 : vector<8x128xf32>
    %15 = vector.extract_strided_slice %9 {offsets = [0, 128], sizes = [8, 128], strides = [1, 1]} : vector<8x256xf32> to vector<8x128xf32>
    %16 = arith.mulf %14, %15 : vector<8x128xf32>
    %c0_9 = arith.constant 0 : index
    %c0_10 = arith.constant 0 : index
    %17 = vector.load %arg5[%c0_9, %c0_10] : memref<8x128xf32, #tpu.memory_space<vmem>>, vector<8x128xf32>
    tpu.vector_store %arg5[%c0_9, %c0_10], %16 {strides = array<i32>} : memref<8x128xf32, #tpu.memory_space<vmem>>, vector<8x128xf32>,
    return
  }
  func.func @transform_0(%arg0: i32) -> (i32, i32) {
    %c0_i32 = arith.constant 0 : i32
    %c0_i32_0 = arith.constant 0 : i32
    return %arg0, %c0_i32 : i32, i32
  }
  func.func @transform_1(%arg0: i32) -> (i32, i32) {
    %c0_i32 = arith.constant 0 : i32
    %c0_i32_0 = arith.constant 0 : i32
    return %arg0, %c0_i32 : i32, i32
  }
  func.func @transform_2(%arg0: i32) -> (i32, i32) {
    %c0_i32 = arith.constant 0 : i32
    %c0_i32_0 = arith.constant 0 : i32
    %c0_i32_1 = arith.constant 0 : i32
    return %c0_i32, %c0_i32_0 : i32, i32
  }
  func.func @transform_3(%arg0: i32) -> (i32, i32) {
    %c0_i32 = arith.constant 0 : i32
    %c0_i32_0 = arith.constant 0 : i32
    %c0_i32_1 = arith.constant 0 : i32
    return %c0_i32, %c0_i32_0 : i32, i32
  }
  func.func @transform_4(%arg0: i32) -> (i32, i32) {
    %c0_i32 = arith.constant 0 : i32
    %c0_i32_0 = arith.constant 0 : i32
    return %arg0, %c0_i32 : i32, i32
  }
}

</mosaic_0001>

<bundles_post_ra>
// kernel: tpu_custom_call.1
= control target key start
LH: loop header
LB: loop body
LE: loop exit
PB: predicated region body
PF: predicated region fallthrough
CT: control target
= control target key end

     0   :  { %9 = vsyncpa [#allocation3], 0  ;;  %s415_s0 = inlined_call_operand.hbm [shape: f32[8,128], index: 0, kind: input, shape index: {}]   ;;  %s416_s1 = inlined_call_operand.hbm [shape: f32[8,128], index: 1, kind: input, shape index: {}]   ;;  %s417_s2 = inlined_call_operand.hbm [shape: bf16[128,256], index: 2, kind: input, shape index: {}]   ;;  %s418_s3 = inlined_call_operand.vmem [shape: f32[1,256], index: 3, kind: input, shape index: {}]   ;;  %s419_s4 = inlined_call_operand.hbm [shape: f32[8,128], index: 4, kind: output, shape index: {}]  }
   0x1   :  { %10 = vsyncpa [#allocation6], 0 }
   0x2   :  { %11 = vsyncpa [#allocation4], 0  ;;  %s368_s15 = smov [#allocation5]   ;;  %s369_s17 = smov [#allocation2]  }
   0x3   :  { %s28_s16 = sshll.u32 %s368_s15, 4  ;;  %s18_s18 = sshll.u32 %s369_s17, 4  ;;  %s29_s16 = int_to_ptr.vmem [resolvable:$true] %s28_s16  ;;  %s19_s18 = int_to_ptr.vmem [resolvable:$true] %s18_s18 }
   0x4   :  { %s290_s19 = scalar_lea.vmem %s29_s16, 128  ;;  %p295_p1 = scmp.lt.s32.totalorder %s29_s16, %s29_s16 }
   0x5   :  { %p291_p0 = scmp.ne.s32.totalorder %s29_s16, %s290_s19  ;;  %p296_p2 = scmp.lt.s32.totalorder %s290_s19, %s290_s19 }
   0x7   :  { %p297_p3 = por %p296_p2, %p295_p1 }
   0x9   :  { %p298_p4 = pnand %p297_p3, %p291_p0 }
   0xb   :  { %301 = shalt.err (!%p298_p4)
}
   0xc   :  { %31 = dma.hbm_to_vmem [thread:$0]  %s416_s1, 128, %s29_s16, [#allocation6]  }
   0xd   :  { %s310_s22 = scalar_lea.vmem %s19_s18, 128  ;;  %p315_p6 = scmp.lt.s32.totalorder %s19_s18, %s19_s18 }
   0xe   :  { %p311_p5 = scmp.ne.s32.totalorder %s19_s18, %s310_s22  ;;  %p316_p7 = scmp.lt.s32.totalorder %s310_s22, %s310_s22 }
  0x10   :  { %p317_p8 = por %p316_p7, %p315_p6 }
  0x12   :  { %p318_p9 = pnand %p317_p8, %p311_p5 }
  0x14   :  { %321 = shalt.err (!%p318_p9)
}
  0x15   :  { %21 = dma.hbm_to_vmem [thread:$0]  %s415_s0, 128, %s19_s18, [#allocation3]  }
  0x16   :  { %s370_s25 = smov [#allocation7]  }
  0x17   :  { %s37_s26 = sshll.u32 %s370_s25, 4  ;;  %s38_s26 = int_to_ptr.vmem [resolvable:$true] %s37_s26 }
  0x18   :  { %s330_s27 = scalar_lea.vmem %s38_s26, 2048  ;;  %p335_p11 = scmp.lt.s32.totalorder %s38_s26, %s38_s26 }
  0x19   :  { %p331_p10 = scmp.ne.s32.totalorder %s38_s26, %s330_s27  ;;  %p336_p12 = scmp.lt.s32.totalorder %s330_s27, %s330_s27 }
  0x1b   :  { %p337_p13 = por %p336_p12, %p335_p11 }
  0x1d   :  { %p338_p0 = pnand %p337_p13, %p331_p10 }
  0x1f   :  { %341 = shalt.err (!%p338_p0)
}
  0x20   :  { %s371_s1 = smov 128   ;;  %s372_s28 = smov 8  }
  0x21   :  { %43 = dma.hbm_to_vmem [thread:$0]  %s417_s2, 2048, %s38_s26, [#allocation6], %s371_s1, %s371_s1, %s372_s28  }
  0x22   :  { %362 = dma.done.wait [#allocation3], 128  }
  0x23   :  { %363 = vsyncadd [#allocation3], 4294967168 }
  0x24   :  { %364 = dma.done.wait [#allocation6], 2176  }
  0x25   :  { %365 = vsyncadd [#allocation6], 4294965120  ;;  %v373_v0 = vmov 0   ;;  %v254_v1 = vld [vmem:[#allocation7 + $0x74] ss:$8 sps:$4 sm:$0xff]   ;;  %v78_v21 = vlaneseq  ;;  %s374_s5 = smov [#allocation8]  }
  0x26   :  { %200 = vmatprep.mubr.bf16.mxu0 %v373_v0  ;;  %v256_v2 = vld [vmem:[#allocation7 + $0x70] ss:$8 sps:$4 sm:$0xff]   ;;  %168 = vmatprep.subr.bf16.mxu0 %v254_v1  ;;  %v257_v3 = vld [vmem:[#allocation7 + $0x64] ss:$8 sps:$4 sm:$0xff]   ;;  %v259_v4 = vld [vmem:[#allocation7 + $0x60] ss:$8 sps:$4 sm:$0xff]  }
  0x27   :  { %169 = vmatpush1.bf16.msra.mxu0 %v256_v2  ;;  %v260_v5 = vld [vmem:[#allocation7 + $0x54] ss:$8 sps:$4 sm:$0xff]   ;;  %v262_v6 = vld [vmem:[#allocation7 + $0x50] ss:$8 sps:$4 sm:$0xff]   ;;  %v263_v7 = vld [vmem:[#allocation7 + $0x44] ss:$8 sps:$4 sm:$0xff]  }
  0x28   :  { %170 = vmatprep.subr.bf16.mxu0 %v257_v3  ;;  %v265_v8 = vld [vmem:[#allocation7 + $0x40] ss:$8 sps:$4 sm:$0xff]   ;;  %v266_v9 = vld [vmem:[#allocation7 + $0x34] ss:$8 sps:$4 sm:$0xff]   ;;  %v268_v10 = vld [vmem:[#allocation7 + $0x30] ss:$8 sps:$4 sm:$0xff]  }
  0x29   :  { %v269_v11 = vld [vmem:[#allocation7 + $0x24] ss:$8 sps:$4 sm:$0xff]   ;;  %v271_v12 = vld [vmem:[#allocation7 + $0x20] ss:$8 sps:$4 sm:$0xff]   ;;  %v272_v13 = vld [vmem:[#allocation7 + $0x14] ss:$8 sps:$4 sm:$0xff]  }
  0x2a   :  { %v274_v14 = vld [vmem:[#allocation7 + $0x10] ss:$8 sps:$4 sm:$0xff]   ;;  %v275_v17 = vld [vmem:[#allocation7 + $0x4] ss:$8 sps:$4 sm:$0xff]   ;;  %v277_v19 = vld [vmem:[#allocation7] ss:$8 sps:$4 sm:$0xff]  }
  0x2b   :  { %171 = vmatpush1.bf16.msra.mxu0 %v259_v4  ;;  %v56_v15 = vld [vmem:[#allocation2] sm:$0xff]  ;;  %v57_v16 = vld [vmem:[#allocation5] sm:$0xff]  ;;  %v79_v22 = vshrl.u32 %v78_v21, 7  ;;  %s221_s6 = sshll.u32 %s374_s5, 4  ;;  %s222_s6 = int_to_ptr.vmem [resolvable:$true] %s221_s6 }
  0x2c   :  { %172 = vmatprep.subr.bf16.mxu0 %v260_v5  ;;  %v58_v18 = vadd.f32 %v57_v16, %v56_v15  ;;  %v76_v24 = vld [vmem:[%s418_s3] sm:$0x3]  ;;  %s342_s3 = scalar_lea.vmem %s222_s6, 128  ;;  %p347_p2 = scmp.lt.s32.totalorder %s222_s6, %s222_s6 }
  0x2d   :  { %v80_v23 = vsub.s32 0, %v79_v22  ;;  %v84_v25 = vsub.s32 1, %v79_v22  ;;  %p343_p1 = scmp.ne.s32.totalorder %s222_s6, %s342_s3  ;;  %p348_p3 = scmp.lt.s32.totalorder %s342_s3, %s342_s3 }
  0x2e   :  { %v59_v20 = vpack.c.bf16 %v58_v18, %v58_v18 }
  0x2f   :  { %173 = vmatpush1.bf16.msra.mxu0 %v262_v6  ;;  %v81_v26 = vrot.slane %v76_v24, %v80_v23  ;;  %v85_v27 = vrot.slane %v76_v24, %v84_v25  ;;  %p349_p4 = por %p348_p3, %p347_p2 }
  0x30   :  { %174 = vmatprep.subr.bf16.mxu0 %v263_v7 }
  0x31   :  { %p350_p5 = pnand %p349_p4, %p343_p1 }
  0x33   :  { %175 = vmatpush1.bf16.msra.mxu0 %v265_v8 }
  0x34   :  { %176 = vmatprep.subr.bf16.mxu0 %v266_v9 }
  0x37   :  { %177 = vmatpush1.bf16.msra.mxu0 %v268_v10 }
  0x38   :  { %178 = vmatprep.subr.bf16.mxu0 %v269_v11 }
  0x3b   :  { %179 = vmatpush1.bf16.msra.mxu0 %v271_v12 }
  0x3c   :  { %180 = vmatprep.subr.bf16.mxu0 %v272_v13 }
  0x3f   :  { %181 = vmatpush1.bf16.msra.mxu0 %v274_v14 }
  0x40   :  { %182 = vmatprep.subr.bf16.mxu0 %v275_v17 }
  0x43   :  { %183 = vmatpush1.bf16.msra.mxu0 %v277_v19 }
  0x46   :  { %201 = vmatmul.mubr.bf16.vlgmr.msra.gmra.mxu0 %v59_v20 }
 0x106   :  { %v202_v28 = vpop.f32.mrf.mxu0 }
 0x107   :  { %v203_v29 = vadd.f32 %v202_v28, %v81_v26 }
 0x108   :  { %v204_v30 = vpop.f32.mrf.mxu0 }
 0x109   :  { %278 = vtanh.f32 %v203_v29  ;;  %v205_v31 = vadd.f32 %v204_v30, %v85_v27 }
 0x10a   :  { %v206_v32 = vpop.f32.mrf.mxu0 }
 0x10b   :  { %280 = vtanh.f32 %v205_v31 }
 0x10c   :  { %v207_v33 = vpop.f32.mrf.mxu0 }
 0x116   :  { %v279_v34 = vpop.eup %278 }
 0x117   :  { %v211_v35 = vadd.f32 1.0, %v279_v34 }
 0x118   :  { %v281_v37 = vpop.eup %280 }
 0x119   :  { %v212_v36 = vmul.f32 0.5, %v211_v35 }
 0x11b   :  { %v213_v38 = vmul.f32 %v281_v37, %v212_v36 }
 0x11d   :  { %214 = vst [vmem:[#allocation8] sm:$0xff] %v213_v38 }
 0x11e   :  { %353 = shalt.err (!%p350_p5)
}
 0x11f   :  { %224 = dma.vmem_to_hbm [thread:$0]  %s222_s6, 128, %s419_s4, [#allocation4]  }
 0x120   :  { %366 = dma.done.wait [#allocation4], 128  }
 0x121   :  { %367 = vsyncadd [#allocation4], 4294967168 }
 0x122   :  { %228 = vsyncpa [#allocation3], 1 }
 0x123   :  { %229 = vsyncpa [#allocation6], 1 }
 0x124   :  { %230 = vsyncpa [#allocation4], 1 }

</bundles_post_ra>
